<compile_context>
chip_gen: v7x
topology: tpu7x:2x2x1
jax: 0.10.0
libtpu: 0.0.40
codegen_flags: <defaults>
</compile_context>

<pallas_src>
import functools
import math

import numpy as np
import jax
import jax.numpy as jnp
from jax.experimental import pallas as pl
from jax.experimental.pallas import tpu as pltpu


# ---------------------------------------------------------------------------
# DeepSetsWithAttention forward (element_nn -> set-sum -> aggregation_nn)
# ---------------------------------------------------------------------------
# TODO(synk): BatchNorm (LazyBatchNorm1d) is implemented in inference mode —
# running statistics are folded into the preceding Linear as a per-channel
# scale/shift.  Training-mode batch statistics are not implemented.

def _deepsets_kernel(hidden, opad,
                     x_ref, pool_ref, w1_ref, ws_ref, bv_ref, o_ref):
    Hd, OP = hidden, opad
    NT = (((1,), (1,)), ((), ()))     # contract dim 1 with dim 1 => y = x @ W^T (no transpose op)

    x = x_ref[...].astype(jnp.float32)        # (B*N, IN)
    pool = pool_ref[...]                      # (B, B*N) 0/1 set-pooling matrix (host constant)
    ws = ws_ref[...]                          # (2*Hd + OP, Hd): [W2_folded ; W3_folded ; W4_lane-padded]
    bv = bv_ref[...]                          # (1, 3*Hd + OP): [b1 | b2 | b3 | b4_pad] (single packed ref)

    b1 = bv[:, 0 * Hd:1 * Hd]
    b2 = bv[:, 1 * Hd:2 * Hd]
    b3 = bv[:, 2 * Hd:3 * Hd]
    b4 = bv[:, 3 * Hd:3 * Hd + OP]

    # element_nn: Linear -> (folded inference BatchNorm) -> ReLU, twice.
    # NOTE: at larger hidden sizes cast these matmul operands to bf16 (f32 accumulate).
    h = jnp.maximum(jax.lax.dot_general(x, w1_ref[...], NT,
                                        preferred_element_type=jnp.float32) + b1, 0.0)
    h = jnp.maximum(jax.lax.dot_general(h, ws[0 * Hd:1 * Hd, :], NT,
                                        preferred_element_type=jnp.float32) + b2, 0.0)

    # Permutation-invariant sum over the set dimension, as a 0/1 pooling matmul
    # (keeps work on the MXU, avoids a 3-D relayout+reduce; matrix is precomputed).
    pooled = jnp.dot(pool, h, preferred_element_type=jnp.float32)    # (B, Hd)

    # aggregation_nn: Linear -> BN -> ReLU -> Linear -> Sigmoid.
    g = jnp.maximum(jax.lax.dot_general(pooled, ws[1 * Hd:2 * Hd, :], NT,
                                        preferred_element_type=jnp.float32) + b3, 0.0)
    z = jax.lax.dot_general(g, ws[2 * Hd:2 * Hd + OP, :], NT,
                            preferred_element_type=jnp.float32) + b4          # (B, OP) lane-dense
    # Numerically-stable sigmoid over the full 128-lane-padded width:
    # clipped exp (no inf path) + EUP approximate reciprocal (no f32 divide).
    ez = jnp.exp(-jnp.clip(z, -30.0, 30.0))
    o_ref[...] = pl.reciprocal(1.0 + ez, approx=True).astype(o_ref.dtype)


def deepsets_forward(x, kp):
    """x: (B, set, input_dim) f32 -> (B, output_dim)."""
    B, N, I = x.shape
    H, O, OP = kp['hidden'], kp['out_dim'], kp['opad']
    x_flat = x.reshape(B * N, I)

    # Host-side constant: pool[b, t] = 1 iff token t belongs to set b.
    tok = np.arange(B * N)
    pool = (tok[None, :] // N == np.arange(B)[:, None]).astype(np.float32)   # (B, B*N)

    kernel = functools.partial(_deepsets_kernel, H, OP)
    # TODO(synk): at large B*N, add a 'parallel' grid axis over whole-set blocks
    # (each block holds complete sets so the pool sum stays local) for v7x's 2 TCs.
    out = pl.pallas_call(
        kernel,
        out_shape=jax.ShapeDtypeStruct((B, OP), x.dtype),
        grid_spec=pltpu.PrefetchScalarGridSpec(
            num_scalar_prefetch=0,
            grid=(1,),   # whole (tiny) problem in one VMEM block: zero per-step overhead
            in_specs=[
                pl.BlockSpec((B * N, I), lambda i: (0, 0)),
                pl.BlockSpec((B, B * N), lambda i: (0, 0)),
                pl.BlockSpec((H, I), lambda i: (0, 0)),
                pl.BlockSpec((2 * H + OP, H), lambda i: (0, 0)),
                pl.BlockSpec((1, 3 * H + OP), lambda i: (0, 0)),
            ],
            out_specs=pl.BlockSpec((B, OP), lambda i: (0, 0)),
        ),
        compiler_params=pltpu.CompilerParams(dimension_semantics=("arbitrary",)),
    )(x_flat, pool, kp['w1f'], kp['wstack'], kp['bvec'])
    return out[:, :O]


def init_deepsets_params(key, input_dim, hidden_dim, output_dim):
    I, H, O = input_dim, hidden_dim, output_dim
    ks = jax.random.split(key, 8)

    def lin(k, o, i):
        bound = 1.0 / math.sqrt(i)
        kw, kb = jax.random.split(k)
        return (jax.random.uniform(kw, (o, i), jnp.float32, -bound, bound),
                jax.random.uniform(kb, (o,), jnp.float32, -bound, bound))

    def bn(k, n):
        k1, k2, k3, k4 = jax.random.split(k, 4)
        return dict(g=1.0 + 0.1 * jax.random.normal(k1, (n,), jnp.float32),
                    b=0.1 * jax.random.normal(k2, (n,), jnp.float32),
                    m=0.2 * jax.random.normal(k3, (n,), jnp.float32),
                    v=jax.random.uniform(k4, (n,), jnp.float32, 0.5, 1.5))

    w1, b1 = lin(ks[0], H, I)
    w2, b2 = lin(ks[1], H, H)
    w3, b3 = lin(ks[2], H, H)
    w4, b4 = lin(ks[3], O, H)
    return dict(w1=w1, b1=b1, bn1=bn(ks[4], H),
                w2=w2, b2=b2, bn2=bn(ks[5], H),
                w3=w3, b3=b3, bn3=bn(ks[6], H),
                w4=w4, b4=b4)


def fold_deepsets_params(p, eps=1e-5, opad=128):
    """One-time prep (kept out of the per-call wrapper): fold inference BatchNorm into
    the preceding Linear, zero-pad the final Linear to a 128-lane output width (so the
    kernel's sigmoid store is full-width/unmasked), and pack small refs densely."""
    def fold(w, b, s):
        sc = s['g'] * jax.lax.rsqrt(s['v'] + eps)
        return w * sc[:, None], (b - s['m']) * sc + s['b']

    H = p['w2'].shape[0]
    O = p['w4'].shape[0]
    w1f, b1f = fold(p['w1'], p['b1'], p['bn1'])
    w2f, b2f = fold(p['w2'], p['b2'], p['bn2'])
    w3f, b3f = fold(p['w3'], p['b3'], p['bn3'])
    w4p = jnp.zeros((opad, H), jnp.float32).at[:O, :].set(p['w4'])
    b4p = jnp.zeros((opad,), jnp.float32).at[:O].set(p['b4'])
    return dict(w1f=w1f,
                wstack=jnp.concatenate([w2f, w3f, w4p], axis=0),                        # (2H+OP, H)
                bvec=jnp.concatenate([b1f, b2f, b3f, b4p]).reshape(1, 3 * H + opad),    # (1, 3H+OP)
                hidden=H, out_dim=O, opad=opad)


def deepsets_reference(x, p, eps=1e-5):
    """Pure-JAX reference of the module forward (inference-mode BatchNorm)."""
    B, N, I = x.shape

    def bn(u, s):
        return (u - s['m']) * jax.lax.rsqrt(s['v'] + eps) * s['g'] + s['b']

    h = x.reshape(B * N, I) @ p['w1'].T + p['b1']
    h = jnp.maximum(bn(h, p['bn1']), 0.0)
    h = h @ p['w2'].T + p['b2']
    h = jnp.maximum(bn(h, p['bn2']), 0.0)
    pooled = h.reshape(B, N, -1).sum(axis=1)
    g = pooled @ p['w3'].T + p['b3']
    g = jnp.maximum(bn(g, p['bn3']), 0.0)
    z = g @ p['w4'].T + p['b4']
    return jax.nn.sigmoid(z)


# ---------------------------------------------------------------------------
# SelfAttention submodule: MHA (with bias) + residual + LayerNorm
# ---------------------------------------------------------------------------

def _mha_ln_kernel(num_heads, seq_len, hidden,
                   x_ref, wqkv_ref, wo_ref, vec_ref, mask_ref, o_ref):
    H, S, E = num_heads, seq_len, hidden
    D = E // H
    TB = x_ref.shape[0]            # batch tile per grid step
    NTOK = TB * S
    scale = 1.0 / math.sqrt(D)
    NT = (((1,), (1,)), ((), ()))  # y = a @ b^T without emitting a transpose

    # Lane-dense (TB, S*E) slab -> token view (TB*S, E) in-kernel.
    x = x_ref[...].reshape(NTOK, E).astype(jnp.float32)
    xb = x.astype(jnp.bfloat16)                    # bf16 operand for the MXU projections

    vecs = vec_ref[...].astype(jnp.float32)        # (1, 6E) packed: bqkv(head-major)|bo|gamma|beta
    b_qkv = vecs[:, 0:3 * E]
    b_o = vecs[:, 3 * E:4 * E]
    gamma = vecs[:, 4 * E:5 * E]
    beta = vecs[:, 5 * E:6 * E]

    mask = mask_ref[...]                           # (NTOK, NTOK) block-diag: 0 same-batch, -1e30 cross
    wo_t = wo_ref[...]                             # (E, E) bf16, pre-transposed (in, out) layout

    # Fused QKV projection (bf16 operands, f32 accumulate).  Weight rows are
    # pre-permuted head-major: columns [h*3D : (h+1)*3D] of qkv are [q_h | k_h | v_h].
    qkv = jax.lax.dot_general(xb, wqkv_ref[...], NT,
                              preferred_element_type=jnp.float32) + b_qkv    # (NTOK, 3E)

    # Per-head attention over the whole token slab as dense 2-D matmuls; the
    # block-diagonal mask keeps batches independent.  Per-head context is
    # accumulated directly into the output projection (no head concat).
    attn = b_o                                                               # (1, E) -> broadcasts
    for h in range(H):
        base = h * 3 * D
        qh = qkv[:, base:base + D]                                           # (NTOK, D)
        kh = qkv[:, base + D:base + 2 * D]
        vh = qkv[:, base + 2 * D:base + 3 * D]
        s = jax.lax.dot_general(qh, kh, NT,
                                preferred_element_type=jnp.float32) * scale  # (NTOK, NTOK)
        s = s + mask
        s = s - jnp.max(s, axis=-1, keepdims=True)
        p = jnp.exp(s)
        p = p * pl.reciprocal(jnp.sum(p, axis=-1, keepdims=True), approx=True)
        ctx_h = jnp.dot(p, vh, preferred_element_type=jnp.float32)           # (NTOK, D)
        attn = attn + jnp.dot(ctx_h.astype(jnp.bfloat16),
                              wo_t[h * D:(h + 1) * D, :],                    # sublane-aligned slice
                              preferred_element_type=jnp.float32)

    # Residual + LayerNorm (eps=1e-5, nn.LayerNorm default), all f32.
    y = x + attn
    mu = jnp.mean(y, axis=-1, keepdims=True)
    var = jnp.mean((y - mu) ** 2, axis=-1, keepdims=True)
    out = (y - mu) * jax.lax.rsqrt(var + 1e-5) * gamma + beta

    o_ref[...] = out.reshape(TB, S * E).astype(o_ref.dtype)   # lane-dense store (width S*E)


def _pick_batch_tile(B, S):
    """Generation-aware batch tile: fill the MXU M dim (~256 tokens, grid=1 on
    single-TC v5e/v6e) but keep >= 2 'parallel' grid steps on v7x (2 TensorCores)."""
    tb = max(1, min(B, max(1, 256 // S)))
    try:
        kind = jax.devices()[0].device_kind.lower()
    except Exception:
        kind = ""
    if "v7" in kind and B > 1:
        tb = min(tb, -(-B // 2))
    return tb


def self_attention_forward(x, kp, num_heads, *, batch_tile=None):
    """x: (B, S, E) f32 -> (B, S, E).  MHA + residual + LayerNorm."""
    B, S, E = x.shape
    assert E % num_heads == 0
    if batch_tile is None:
        batch_tile = _pick_batch_tile(B, S)
    tb = max(1, min(batch_tile, B))
    n_steps = -(-B // tb)
    Bp = n_steps * tb

    # Lane-dense slab: last dim S*E (>=128) -> unmasked full-width stores.
    x2 = x.reshape(B, S * E)
    if Bp != B:
        # Pad ragged batches up to a full tile (keeps sublane/lane-dense shapes);
        # the block-diagonal mask keeps padded batches from touching real ones.
        x2 = jnp.pad(x2, ((0, Bp - B), (0, 0)))

    # Host-side block-diagonal batch mask over the (tb*S) token slab.
    ntok = tb * S
    tok = np.arange(ntok)
    mask = np.where((tok[:, None] // S) == (tok[None, :] // S),
                    0.0, -1e30).astype(np.float32)                     # (ntok, ntok)

    kernel = functools.partial(_mha_ln_kernel, num_heads, S, E)
    out2 = pl.pallas_call(
        kernel,
        out_shape=jax.ShapeDtypeStruct((Bp, S * E), x.dtype),
        grid_spec=pltpu.PrefetchScalarGridSpec(
            num_scalar_prefetch=0,
            grid=(n_steps,),
            in_specs=[
                pl.BlockSpec((tb, S * E), lambda b: (b, 0)),     # batch-tiled x slab
                pl.BlockSpec((3 * E, E), lambda b: (0, 0)),      # fused, head-permuted Wqkv (bf16)
                pl.BlockSpec((E, E), lambda b: (0, 0)),          # Wo^T (bf16)
                pl.BlockSpec((1, 6 * E), lambda b: (0, 0)),      # packed bqkv|bo|gamma|beta
                pl.BlockSpec((ntok, ntok), lambda b: (0, 0)),    # block-diag batch mask
            ],
            out_specs=pl.BlockSpec((tb, S * E), lambda b: (b, 0)),
        ),
        # NOTE: at larger E, single-buffer the grid-invariant weight specs
        # (pipeline_mode=pl.Buffered(1)) and set vmem_limit_bytes explicitly
        # (mandatory on v7x's 64 MiB VMEM well before v5e/v6e's 128 MiB).
        compiler_params=pltpu.CompilerParams(dimension_semantics=("parallel",)),
    )(x2, kp['wqkv'], kp['wo_t'], kp['vecs'], mask)
    return out2[:B].reshape(B, S, E)


def init_attention_params(key, hidden_dim):
    """Raw nn.MultiheadAttention-style parameters (PyTorch (out,in) layout)."""
    E = hidden_dim
    ks = jax.random.split(key, 7)
    bound = math.sqrt(6.0 / (2 * E))
    wq = jax.random.uniform(ks[0], (E, E), jnp.float32, -bound, bound)
    wk = jax.random.uniform(ks[1], (E, E), jnp.float32, -bound, bound)
    wv = jax.random.uniform(ks[2], (E, E), jnp.float32, -bound, bound)
    wo = jax.random.uniform(ks[3], (E, E), jnp.float32, -bound, bound)
    biases = 0.05 * jax.random.normal(ks[4], (4 * E,), jnp.float32)
    gamma = 1.0 + 0.1 * jax.random.normal(ks[5], (E,), jnp.float32)
    beta = 0.1 * jax.random.normal(ks[6], (E,), jnp.float32)
    return dict(wq=wq, wk=wk, wv=wv, wo=wo,
                bq=biases[:E], bk=biases[E:2 * E], bv=biases[2 * E:3 * E], bo=biases[3 * E:],
                gamma=gamma, beta=beta)


def fold_attention_params(p, num_heads):
    """One-time prep: permute the fused QKV weight/bias rows head-major
    ([q_h | k_h | v_h] blocks) so in-kernel per-head slices are contiguous,
    pre-transpose Wo so per-head slices are sublane-aligned rows, cast the
    projection weights to bf16, and pack all small vectors into one (1,6E) ref."""
    E = p['wq'].shape[0]
    H = num_heads
    D = E // H

    def head_major(arrs):
        blocks = []
        for h in range(H):
            for a in arrs:
                blocks.append(a[h * D:(h + 1) * D])
        return jnp.concatenate(blocks, axis=0)

    wqkv = head_major([p['wq'], p['wk'], p['wv']]).astype(jnp.bfloat16)         # (3E, E)
    bqkv = head_major([p['bq'], p['bk'], p['bv']])                              # (3E,)
    wo_t = p['wo'].T.astype(jnp.bfloat16)                                       # (E, E) (in, out)
    vecs = jnp.concatenate([bqkv, p['bo'], p['gamma'], p['beta']]).reshape(1, 6 * E)
    return dict(wqkv=wqkv, wo_t=wo_t, vecs=vecs)


def attention_reference(x, p, num_heads):
    """Pure-JAX reference of nn.MultiheadAttention + residual + LayerNorm."""
    B, S, E = x.shape
    H = num_heads
    D = E // H
    q = (x @ p['wq'].T + p['bq']).reshape(B, S, H, D)
    k = (x @ p['wk'].T + p['bk']).reshape(B, S, H, D)
    v = (x @ p['wv'].T + p['bv']).reshape(B, S, H, D)
    s = jnp.einsum('bqhd,bkhd->bhqk', q, k) / math.sqrt(D)
    a = jax.nn.softmax(s, axis=-1)
    ctx = jnp.einsum('bhqk,bkhd->bqhd', a, v).reshape(B, S, E)
    attn = ctx @ p['wo'].T + p['bo']
    y = x + attn
    mu = jnp.mean(y, axis=-1, keepdims=True)
    var = jnp.mean((y - mu) ** 2, axis=-1, keepdims=True)
    return (y - mu) * jax.lax.rsqrt(var + 1e-5) * p['gamma'] + p['beta']


# ---------------------------------------------------------------------------
if __name__ == "__main__":
    key = jax.random.PRNGKey(0)
    k1, k2, k3, k4 = jax.random.split(key, 4)

    # --- DeepSetsWithAttention forward (module defaults: input_dim=2, hidden=8, out=1) ---
    B, SET, IN, HID, OUT, NHEADS = 5, 8, 2, 8, 1, 4
    x = jax.random.normal(k1, (B, SET, IN), jnp.float32)
    raw_params = init_deepsets_params(k2, IN, HID, OUT)
    kparams = fold_deepsets_params(raw_params)          # one-time prep (fold BN, pad/pack refs)

    out = deepsets_forward(x, kparams)
    out = jax.block_until_ready(out)
    with jax.default_matmul_precision("highest"):
        ref = deepsets_reference(x, raw_params)
    assert out.shape == (B, OUT)
    # tolerance covers the EUP approximate reciprocal in the in-kernel sigmoid
    assert jnp.allclose(out, ref, atol=5e-3, rtol=5e-3), \
        f"deepsets max err {jnp.max(jnp.abs(out - ref))}"

    # --- SelfAttention submodule kernel (constructed by the module; verified standalone) ---
    AB, S, E = 16, 8, 32            # batch, seq, hidden for the attention demo
    xa = jax.random.normal(k3, (AB, S, E), jnp.float32)
    raw_attn = init_attention_params(k4, E)
    aparams = fold_attention_params(raw_attn, NHEADS)   # one-time prep (permute/fuse/pack, bf16)

    aout = self_attention_forward(xa, aparams, NHEADS)  # generation-aware batch tile
    aout = jax.block_until_ready(aout)
    with jax.default_matmul_precision("highest"):
        aref = attention_reference(xa, raw_attn, NHEADS)
    assert aout.shape == (AB, S, E)
    # tolerance covers bf16 MXU projection operands + EUP approximate reciprocal
    assert jnp.allclose(aout, aref, atol=3e-2, rtol=3e-2), \
        f"attention max err {jnp.max(jnp.abs(aout - aref))}"

    print("KERNEL_OK")
</pallas_src>

<mosaic_0001>
module attributes {stable_mosaic.version = 11 : i64} {
  func.func @_deepsets_kernel(%arg0: i32, %arg1: memref<40x2xf32, #tpu.memory_space<vmem>>, %arg2: memref<5x40xf32, #tpu.memory_space<vmem>>, %arg3: memref<8x2xf32, #tpu.memory_space<vmem>>, %arg4: memref<144x8xf32, #tpu.memory_space<vmem>>, %arg5: memref<1x152xf32, #tpu.memory_space<vmem>>, %arg6: memref<5x128xf32, #tpu.memory_space<vmem>>) attributes {dimension_semantics = [#tpu.dimension_semantics<arbitrary>], iteration_bounds = array<i64: 1>, scalar_prefetch = 0 : i64, scratch_operands = 0 : i64, tpu.core_type = #tpu.core_type<tc>, window_params = [{pipeline_mode = #tpu.pipeline_mode<synchronous>, transform_indices = @transform_0, window_bounds = array<i64: 40, 2>}, {pipeline_mode = #tpu.pipeline_mode<synchronous>, transform_indices = @transform_1, window_bounds = array<i64: 5, 40>}, {pipeline_mode = #tpu.pipeline_mode<synchronous>, transform_indices = @transform_2, window_bounds = array<i64: 8, 2>}, {pipeline_mode = #tpu.pipeline_mode<synchronous>, transform_indices = @transform_3, window_bounds = array<i64: 144, 8>}, {pipeline_mode = #tpu.pipeline_mode<synchronous>, transform_indices = @transform_4, window_bounds = array<i64: 1, 152>}, {pipeline_mode = #tpu.pipeline_mode<synchronous>, transform_indices = @transform_5, window_bounds = array<i64: 5, 128>}]} {
    %c0 = arith.constant 0 : index
    %c0_0 = arith.constant 0 : index
    %0 = vector.load %arg1[%c0, %c0_0] : memref<40x2xf32, #tpu.memory_space<vmem>>, vector<40x2xf32>
    %c0_1 = arith.constant 0 : index
    %c0_2 = arith.constant 0 : index
    %1 = vector.load %arg2[%c0_1, %c0_2] : memref<5x40xf32, #tpu.memory_space<vmem>>, vector<5x40xf32>
    %c0_3 = arith.constant 0 : index
    %c0_4 = arith.constant 0 : index
    %2 = vector.load %arg4[%c0_3, %c0_4] : memref<144x8xf32, #tpu.memory_space<vmem>>, vector<144x8xf32>
    %c0_5 = arith.constant 0 : index
    %c0_6 = arith.constant 0 : index
    %3 = vector.load %arg5[%c0_5, %c0_6] : memref<1x152xf32, #tpu.memory_space<vmem>>, vector<1x152xf32>
    %4 = vector.extract_strided_slice %3 {offsets = [0, 0], sizes = [1, 8], strides = [1, 1]} : vector<1x152xf32> to vector<1x8xf32>
    %5 = vector.extract_strided_slice %3 {offsets = [0, 8], sizes = [1, 8], strides = [1, 1]} : vector<1x152xf32> to vector<1x8xf32>
    %6 = vector.extract_strided_slice %3 {offsets = [0, 16], sizes = [1, 8], strides = [1, 1]} : vector<1x152xf32> to vector<1x8xf32>
    %7 = vector.extract_strided_slice %3 {offsets = [0, 24], sizes = [1, 128], strides = [1, 1]} : vector<1x152xf32> to vector<1x128xf32>
    %c0_7 = arith.constant 0 : index
    %c0_8 = arith.constant 0 : index
    %8 = vector.load %arg3[%c0_7, %c0_8] : memref<8x2xf32, #tpu.memory_space<vmem>>, vector<8x2xf32>
    %cst = arith.constant dense<0.000000e+00> : vector<40x8xf32>
    %9 = tpu.matmul %0, %8, %cst {dimension_numbers = #tpu.dot_dimension_numbers<[1], [1], [0], [0], [0, 0, 1, 0], [], []>} : vector<40x2xf32>, vector<8x2xf32>, vector<40x8xf32> -> vector<40x8xf32>
    %10 = vector.broadcast %4 : vector<1x8xf32> to vector<40x8xf32>
    %11 = arith.addf %9, %10 : vector<40x8xf32>
    %cst_9 = arith.constant 0.000000e+00 : f32
    %12 = vector.broadcast %cst_9 : f32 to vector<40x8xf32>
    %13 = arith.maximumf %11, %12 : vector<40x8xf32>
    %14 = vector.extract_strided_slice %2 {offsets = [0, 0], sizes = [8, 8], strides = [1, 1]} : vector<144x8xf32> to vector<8x8xf32>
    %cst_10 = arith.constant dense<0.000000e+00> : vector<40x8xf32>
    %15 = tpu.matmul %13, %14, %cst_10 {dimension_numbers = #tpu.dot_dimension_numbers<[1], [1], [0], [0], [0, 0, 1, 0], [], []>} : vector<40x8xf32>, vector<8x8xf32>, vector<40x8xf32> -> vector<40x8xf32>
    %16 = vector.broadcast %5 : vector<1x8xf32> to vector<40x8xf32>
    %17 = arith.addf %15, %16 : vector<40x8xf32>
    %cst_11 = arith.constant 0.000000e+00 : f32
    %18 = vector.broadcast %cst_11 : f32 to vector<40x8xf32>
    %19 = arith.maximumf %17, %18 : vector<40x8xf32>
    %cst_12 = arith.constant dense<0.000000e+00> : vector<5x8xf32>
    %20 = tpu.matmul %1, %19, %cst_12 {dimension_numbers = #tpu.dot_dimension_numbers<[1], [0], [0], [1], [0, 0, 1, 1], [], []>} : vector<5x40xf32>, vector<40x8xf32>, vector<5x8xf32> -> vector<5x8xf32>
    %21 = vector.extract_strided_slice %2 {offsets = [8, 0], sizes = [8, 8], strides = [1, 1]} : vector<144x8xf32> to vector<8x8xf32>
    %cst_13 = arith.constant dense<0.000000e+00> : vector<5x8xf32>
    %22 = tpu.matmul %20, %21, %cst_13 {dimension_numbers = #tpu.dot_dimension_numbers<[1], [1], [0], [0], [0, 0, 1, 0], [], []>} : vector<5x8xf32>, vector<8x8xf32>, vector<5x8xf32> -> vector<5x8xf32>
    %23 = vector.broadcast %6 : vector<1x8xf32> to vector<5x8xf32>
    %24 = arith.addf %22, %23 : vector<5x8xf32>
    %cst_14 = arith.constant 0.000000e+00 : f32
    %25 = vector.broadcast %cst_14 : f32 to vector<5x8xf32>
    %26 = arith.maximumf %24, %25 : vector<5x8xf32>
    %27 = vector.extract_strided_slice %2 {offsets = [16, 0], sizes = [128, 8], strides = [1, 1]} : vector<144x8xf32> to vector<128x8xf32>
    %cst_15 = arith.constant dense<0.000000e+00> : vector<5x128xf32>
    %28 = tpu.matmul %26, %27, %cst_15 {dimension_numbers = #tpu.dot_dimension_numbers<[1], [1], [0], [0], [0, 0, 1, 0], [], []>} : vector<5x8xf32>, vector<128x8xf32>, vector<5x128xf32> -> vector<5x128xf32>
    %29 = vector.broadcast %7 : vector<1x128xf32> to vector<5x128xf32>
    %30 = arith.addf %28, %29 : vector<5x128xf32>
    %cst_16 = arith.constant -3.000000e+01 : f32
    %cst_17 = arith.constant 3.000000e+01 : f32
    %31 = vector.broadcast %cst_16 : f32 to vector<5x128xf32>
    %32 = arith.maximumf %31, %30 : vector<5x128xf32>
    %33 = vector.broadcast %cst_17 : f32 to vector<5x128xf32>
    %34 = arith.minimumf %33, %32 : vector<5x128xf32>
    %cst_18 = arith.constant 0.000000e+00 : f32
    %35 = vector.broadcast %cst_18 : f32 to vector<5x128xf32>
    %36 = arith.subf %35, %34 : vector<5x128xf32>
    %37 = math.exp %36 : vector<5x128xf32>
    %cst_19 = arith.constant 1.000000e+00 : f32
    %38 = vector.broadcast %cst_19 : f32 to vector<5x128xf32>
    %39 = arith.addf %38, %37 : vector<5x128xf32>
    %40 = tpu.reciprocal %39 {approx = true} : vector<5x128xf32> -> vector<5x128xf32>
    %c0_20 = arith.constant 0 : index
    %c0_21 = arith.constant 0 : index
    %41 = vector.load %arg6[%c0_20, %c0_21] : memref<5x128xf32, #tpu.memory_space<vmem>>, vector<5x128xf32>
    tpu.vector_store %arg6[%c0_20, %c0_21], %40 {strides = array<i32>} : memref<5x128xf32, #tpu.memory_space<vmem>>, vector<5x128xf32>,
    return
  }
  func.func @transform_0(%arg0: i32) -> (i32, i32) {
    %c0_i32 = arith.constant 0 : i32
    %c0_i32_0 = arith.constant 0 : i32
    %c0_i32_1 = arith.constant 0 : i32
    return %c0_i32, %c0_i32_0 : i32, i32
  }
  func.func @transform_1(%arg0: i32) -> (i32, i32) {
    %c0_i32 = arith.constant 0 : i32
    %c0_i32_0 = arith.constant 0 : i32
    %c0_i32_1 = arith.constant 0 : i32
    return %c0_i32, %c0_i32_0 : i32, i32
  }
  func.func @transform_2(%arg0: i32) -> (i32, i32) {
    %c0_i32 = arith.constant 0 : i32
    %c0_i32_0 = arith.constant 0 : i32
    %c0_i32_1 = arith.constant 0 : i32
    return %c0_i32, %c0_i32_0 : i32, i32
  }
  func.func @transform_3(%arg0: i32) -> (i32, i32) {
    %c0_i32 = arith.constant 0 : i32
    %c0_i32_0 = arith.constant 0 : i32
    %c0_i32_1 = arith.constant 0 : i32
    return %c0_i32, %c0_i32_0 : i32, i32
  }
  func.func @transform_4(%arg0: i32) -> (i32, i32) {
    %c0_i32 = arith.constant 0 : i32
    %c0_i32_0 = arith.constant 0 : i32
    %c0_i32_1 = arith.constant 0 : i32
    return %c0_i32, %c0_i32_0 : i32, i32
  }
  func.func @transform_5(%arg0: i32) -> (i32, i32) {
    %c0_i32 = arith.constant 0 : i32
    %c0_i32_0 = arith.constant 0 : i32
    %c0_i32_1 = arith.constant 0 : i32
    return %c0_i32, %c0_i32_0 : i32, i32
  }
}

</mosaic_0001>

<bundles_post_ra>
// kernel: tpu_custom_call.1
= control target key start
LH: loop header
LB: loop body
LE: loop exit
PB: predicated region body
PF: predicated region fallthrough
CT: control target
= control target key end

     0   :  { %vm53_vm0 = vcmask 15360   ;;  %v822_v1 = vmov 0.0   ;;  %vm823_vm1 = vmmov 0   ;;  %s1044_s0 = inlined_call_operand.vmem [shape: f32[40,2], index: 0, kind: input, shape index: {}]   ;;  %s1045_s1 = inlined_call_operand.vmem [shape: f32[5,40], index: 1, kind: input, shape index: {}]   ;;  %s1046_s2 = inlined_call_operand.vmem [shape: f32[8,2], index: 2, kind: input, shape index: {}]   ;;  %s1047_s3 = inlined_call_operand.vmem [shape: f32[144,8], index: 3, kind: input, shape index: {}]   ;;  %s1048_s4 = inlined_call_operand.vmem [shape: f32[1,152], index: 4, kind: input, shape index: {}]   ;;  %s1049_s5 = inlined_call_operand.hbm [shape: f32[5,128], index: 5, kind: output, shape index: {}]  }
   0x1   :  { %v46_v0 = vld [vmem:[%s1046_s2] sm:$0xff]  ;;  %662 = vmatprep.subr.mxu1 %v822_v1  ;;  %664 = vmatprep.mubr.msk.f32.mxu1 %vm823_vm1, %v822_v1 }
   0x2   :  { %663 = vmatpush3.xpose.msk.msra.mxu1 %vm53_vm0, %v46_v0  ;;  %v21_v2 = vld [vmem:[%s1044_s0] sm:$0xff]  ;;  %746 = vmatprep.mubr.msk.f32.mxu0 %vm823_vm1, %v822_v1 }
   0x3   :  { %10 = vsyncpa [#allocation3], 0  ;;  %679 = vmatprep.subr.mxu1 %v822_v1  ;;  %v27_v3 = vld [vmem:[%s1047_s3] sm:$0xff]  ;;  %vm170_vm2 = vcmask 64512   ;;  %v22_v4 = vld [vmem:[%s1044_s0 + $0x8] sm:$0xff]  ;;  %v48_v8 = vlaneseq  ;;  %s824_s8 = smov 120  }
   0x4   :  { %v23_v5 = vld [vmem:[%s1044_s0 + $0x10] sm:$0xff]  ;;  %v24_v6 = vld [vmem:[%s1044_s0 + $0x18] sm:$0xff]  ;;  %v25_v7 = vld [vmem:[%s1044_s0 + $0x20] sm:$0xff]  ;;  %v825_v33 = vmov 0.0|0.0   ;;  %vm284_vm3 = vcmask 326656   ;;  %s826_s14 = smov 112  }
   0x5   :  { %665 = vmatmul.mubr.msk.f32.vlgmr.msra.gmra.mrb[0].mxu1 %vm53_vm0, %v21_v2  ;;  %v903_v9 = vshrl.u32 %v48_v8, 7  ;;  %v909_v11 = vld [vmem:[%s1048_s4] sm:$0x3]  ;;  %755 = vmatprep.subr.bf16.mxu0 %v825_v33  ;;  %v28_v58 = vld [vmem:[%s1047_s3 + $0x8] sm:$0xff]  ;;  %v29_v59 = vld [vmem:[%s1047_s3 + $0x10] sm:$0xff]  ;;  %vm446_vm5 = vcmask 850944  }
   0x6   :  { %667 = vmatprep.mubr.msk.f32.mxu1 %vm823_vm1, %v822_v1  ;;  %680 = vmatpush3.xpose.msk.msra.mxu1 %vm170_vm2, %v27_v3  ;;  %v26_v57 = vld [vmem:[%s1045_s1] sm:$0x1f]  ;;  %v30_v60 = vld [vmem:[%s1047_s3 + $0x18] sm:$0xff]  ;;  %vm957_vm4 = vmpackc.low %vm170_vm2, %vm170_vm2 }
   0x7   :  { %v50_v10 = vsub.s32 0, %v903_v9  ;;  %749 = vmatprep.subr.bf16.mxu1 %v825_v33  ;;  %v756_v62 = vpack.c.bf16 %v30_v60, %v29_v59  ;;  %v31_v63 = vld [vmem:[%s1047_s3 + $0x20] sm:$0xff]  ;;  %v32_v0 = vld [vmem:[%s1047_s3 + $0x28] sm:$0xff]  ;;  %v33_v2 = vld [vmem:[%s1047_s3 + $0x30] sm:$0xff] }
   0x8   :  { %v34_v3 = vld [vmem:[%s1047_s3 + $0x38] sm:$0xff]  ;;  %v37_v8 = vld [vmem:[%s1047_s3 + $0x50] sm:$0xff] }
   0x9   :  { %668 = vmatmul.mubr.msk.f32.gmra.mrb[2].mxu1 %vm53_vm0, %v22_v4  ;;  %v912_v12 = vrot.slane %v909_v11, %v50_v10  ;;  %758 = vmatpush3.bf16.xpose.msk.msra.mxu0 %vm957_vm4, %v756_v62  ;;  %v764_v4 = vpack.c.bf16 %v34_v3, %v33_v2  ;;  %v38_v10 = vld [vmem:[%s1047_s3 + $0x58] sm:$0xff] }
   0xa   :  { %670 = vmatprep.mubr.msk.f32.mxu1 %vm823_vm1, %v822_v1  ;;  %759 = vmatprep.subr.bf16.mxu0 %v825_v33 }
   0xb   :  { %167 = vrot.lane.b32.xlu0 %v912_v12, %s824_s8 }
   0xd   :  { %671 = vmatmul.mubr.msk.f32.gmra.mrb[4].mxu1 %vm53_vm0, %v23_v5  ;;  %v35_v5 = vld [vmem:[%s1047_s3 + $0x40] sm:$0xff] }
   0xe   :  { %673 = vmatprep.mubr.msk.f32.mxu1 %vm823_vm1, %v822_v1 }
   0xf   :  { %358 = vrot.lane.b32.xlu0 %v912_v12, %s826_s14  ;;  %s827_s14 = smov 104  }
  0x10   :  { %442 = vrot.lane.b32.xlu1 %v912_v12, %s827_s14 }
  0x11   :  { %674 = vmatmul.mubr.msk.f32.gmra.mrb[6].mxu1 %vm53_vm0, %v24_v6  ;;  %v36_v6 = vld [vmem:[%s1047_s3 + $0x48] sm:$0xff] }
  0x12   :  { %676 = vmatprep.mubr.msk.f32.mxu1 %vm823_vm1, %v822_v1 }
  0x15   :  { %677 = vmatmul.mubr.msk.f32.gmra.mrb[8].mxu1 %vm53_vm0, %v25_v7  ;;  %v768_v7 = vpack.c.bf16 %v36_v6, %v35_v5 }
  0x16   :  { %681 = vmatprep.mubr.msk.f32.mxu1 %vm823_vm1, %v822_v1 }
  0x7d   :  { %v168_v34 = vpop.permute.xlu0 %167 }
  0xd8   :  { %v138_v13 = vpop.f32.mrb[0].mxu1 }
  0xd9   :  { %v139_v14 = vadd.f32 %v138_v13, %v912_v12  ;;  %v666_v15 = vpop.f32.mrb[1].mxu1  ;;  %v772_v13 = vpack.c.bf16 %v38_v10, %v37_v8 }
  0xda   :  { %v40_v15 = vld [vmem:[%s1047_s3 + $0x68] sm:$0xff] }
  0xdb   :  { %v162_v16 = vmax.f32 %v139_v14, 0.0  ;;  %v39_v14 = vld [vmem:[%s1047_s3 + $0x60] sm:$0xff] }
  0xdc   :  { %v143_v17 = vpop.f32.mrb[2].mxu1 }
  0xdd   :  { %v144_v18 = vadd.f32 %v143_v17, %v912_v12  ;;  %v669_v19 = vpop.f32.mrb[3].mxu1  ;;  %682 = vmatmul.mubr.msk.f32.vlgmr.msra.gmra.mrb[10].mxu1 %vm170_vm2, %v162_v16  ;;  %v776_v16 = vpack.c.bf16 %v40_v15, %v39_v14  ;;  %v41_v17 = vld [vmem:[%s1047_s3 + $0x70] sm:$0xff] }
  0xde   :  { %684 = vmatprep.mubr.msk.f32.mxu1 %vm823_vm1, %v822_v1 }
  0xdf   :  { %v163_v20 = vmax.f32 %v144_v18, 0.0  ;;  %v42_v18 = vld [vmem:[%s1047_s3 + $0x78] sm:$0xff] }
  0xe0   :  { %v148_v21 = vpop.f32.mrb[4].mxu1  ;;  %v780_v19 = vpack.c.bf16 %v42_v18, %v41_v17 }
  0xe1   :  { %v149_v22 = vadd.f32 %v148_v21, %v912_v12  ;;  %v672_v23 = vpop.f32.mrb[5].mxu1  ;;  %685 = vmatmul.mubr.msk.f32.gmra.mrb[12].mxu1 %vm170_vm2, %v163_v20  ;;  %v43_v20 = vld [vmem:[%s1047_s3 + $0x80] sm:$0xff]  ;;  %v44_v21 = vld [vmem:[%s1047_s3 + $0x88] sm:$0xff]  ;;  %s828_s3 = smov [#allocation2]  }
  0xe2   :  { %687 = vmatprep.mubr.msk.f32.mxu1 %vm823_vm1, %v822_v1  ;;  %s584_s15 = sshll.u32 %s828_s3, 4  ;;  %s585_s15 = int_to_ptr.vmem [resolvable:$true] %s584_s15 }
  0xe3   :  { %v164_v24 = vmax.f32 %v149_v22, 0.0  ;;  %v784_v22 = vpack.c.bf16 %v44_v21, %v43_v20  ;;  %s798_s16 = scalar_lea.vmem %s585_s15, 128  ;;  %p803_p1 = scmp.lt.s32.totalorder %s585_s15, %s585_s15 }
  0xe4   :  { %v153_v25 = vpop.f32.mrb[6].mxu1  ;;  %p799_p0 = scmp.ne.s32.totalorder %s585_s15, %s798_s16  ;;  %p804_p2 = scmp.lt.s32.totalorder %s798_s16, %s798_s16 }
  0xe5   :  { %v154_v26 = vadd.f32 %v153_v25, %v912_v12  ;;  %v675_v27 = vpop.f32.mrb[7].mxu1  ;;  %688 = vmatmul.mubr.msk.f32.gmra.mrb[14].mxu1 %vm170_vm2, %v164_v24  ;;  %v440_v25 = vsub.s32 1, %v903_v9 }
  0xe6   :  { %690 = vmatprep.mubr.msk.f32.mxu1 %vm823_vm1, %v822_v1  ;;  %v359_v27 = vpop.permute.xlu0 %358  ;;  %p805_p3 = por %p804_p2, %p803_p1 }
  0xe7   :  { %v165_v28 = vmax.f32 %v154_v26, 0.0  ;;  %v441_v26 = vrot.slane %v909_v11, %v440_v25 }
  0xe8   :  { %v158_v29 = vpop.f32.mrb[8].mxu1  ;;  %p806_p4 = pnand %p805_p3, %p799_p0 }
  0xe9   :  { %v159_v30 = vadd.f32 %v158_v29, %v912_v12  ;;  %691 = vmatmul.mubr.msk.f32.gmra.mrb[16].mxu1 %vm170_vm2, %v165_v28  ;;  %v678_v31 = vpop.f32.mrb[9].mxu1  ;;  %444 = vrot.lane.b32.xlu1 %v441_v26, %s827_s14 }
  0xea   :  { %693 = vmatprep.mubr.msk.f32.mxu1 %vm823_vm1, %v822_v1 }
  0xeb   :  { %v166_v32 = vmax.f32 %v159_v30, 0.0 }
  0xed   :  { %694 = vmatmul.mubr.msk.f32.gmra.mrb[18].mxu1 %vm170_vm2, %v166_v32  ;;  %v443_v32 = vpop.permute.xlu1 %442 }
  0xee   :  { %706 = vmatprep.mubr.msk.f32.mxu1 %vm823_vm1, %v822_v1 }
 0x1b0   :  { %v255_v35 = vpop.f32.mrb[10].mxu1 }
 0x1b1   :  { %v683_v36 = vpop.f32.mrb[11].mxu1  ;;  %v256_v37 = vadd.f32 %v255_v35, %v168_v34 }
 0x1b3   :  { %v279_v41 = vmax.f32 %v256_v37, 0.0 }
 0x1b4   :  { %v260_v38 = vpop.f32.mrb[12].mxu1 }
 0x1b5   :  { %v261_v39 = vadd.f32 %v260_v38, %v168_v34  ;;  %v686_v40 = vpop.f32.mrb[13].mxu1 }
 0x1b7   :  { %v280_v42 = vmax.f32 %v261_v39, 0.0 }
 0x1b8   :  { %v265_v43 = vpop.f32.mrb[14].mxu1 }
 0x1b9   :  { %v750_v44 = vpack.c.bf16 %v280_v42, %v279_v41  ;;  %v689_v45 = vpop.f32.mrb[15].mxu1  ;;  %v266_v46 = vadd.f32 %v265_v43, %v168_v34 }
 0x1bb   :  { %751 = vmatpush3.bf16.msra.mxu1 %v750_v44  ;;  %v281_v50 = vmax.f32 %v266_v46, 0.0 }
 0x1bc   :  { %v270_v47 = vpop.f32.mrb[16].mxu1  ;;  %752 = vmatprep.subr.bf16.mxu1 %v825_v33 }
 0x1bd   :  { %v271_v48 = vadd.f32 %v270_v47, %v168_v34  ;;  %v692_v49 = vpop.f32.mrb[17].mxu1 }
 0x1bf   :  { %v282_v51 = vmax.f32 %v271_v48, 0.0 }
 0x1c0   :  { %v275_v52 = vpop.f32.mrb[18].mxu1 }
 0x1c1   :  { %v753_v53 = vpack.c.bf16 %v282_v51, %v281_v50  ;;  %v276_v54 = vadd.f32 %v275_v52, %v168_v34  ;;  %v695_v55 = vpop.f32.mrb[19].mxu1 }
 0x1c3   :  { %754 = vmatpush3.bf16.msra.mxu1 %v753_v53  ;;  %v283_v56 = vmax.f32 %v276_v54, 0.0 }
 0x1c4   :  { %704 = vmatprep.subr.mxu1 %v822_v1 }
 0x1c7   :  { %705 = vmatpush3.msra.mxu1 %v283_v56 }
 0x1c8   :  { %707 = vmatmul.mubr.msk.f32.vlgmr.msra.gmra.mrb[20].mxu1 %vm284_vm3, %v26_v57  ;;  %709 = vmatprep.subr.mxu1 %v822_v1 }
 0x1c9   :  { %711 = vmatprep.mubr.msk.f32.mxu1 %vm823_vm1, %v822_v1  ;;  %v760_v1 = vpack.c.bf16 %v32_v0, %v31_v63 }
 0x1cb   :  { %762 = vmatpush3.bf16.xpose.msk.msra.mxu0 %vm957_vm4, %v760_v1 }
 0x1cc   :  { %763 = vmatprep.subr.bf16.mxu0 %v825_v33 }
 0x1ce   :  { %710 = vmatpush3.xpose.msk.msra.mxu1 %vm170_vm2, %v28_v58 }
 0x1d3   :  { %766 = vmatpush3.bf16.xpose.msk.msra.mxu0 %vm957_vm4, %v764_v4 }
 0x1d4   :  { %767 = vmatprep.subr.bf16.mxu0 %v825_v33 }
 0x1db   :  { %770 = vmatpush3.bf16.xpose.msk.msra.mxu0 %vm957_vm4, %v768_v7 }
 0x1dc   :  { %771 = vmatprep.subr.bf16.mxu0 %v825_v33 }
 0x1e3   :  { %774 = vmatpush3.bf16.xpose.msk.msra.mxu0 %vm957_vm4, %v772_v13 }
 0x1e4   :  { %775 = vmatprep.subr.bf16.mxu0 %v825_v33 }
 0x1eb   :  { %778 = vmatpush3.bf16.xpose.msk.msra.mxu0 %vm957_vm4, %v776_v16 }
 0x1ec   :  { %779 = vmatprep.subr.bf16.mxu0 %v825_v33 }
 0x1f3   :  { %782 = vmatpush3.bf16.xpose.msk.msra.mxu0 %vm957_vm4, %v780_v19 }
 0x1f4   :  { %783 = vmatprep.subr.bf16.mxu0 %v825_v33  ;;  %v445_v33 = vpop.permute.xlu1 %444 }
 0x1f5   :  { %v447_v34 = vsel %vm446_vm5, %v443_v32, %v445_v33 }
 0x1fb   :  { %786 = vmatpush3.bf16.xpose.msk.msra.mxu0 %vm957_vm4, %v784_v22 }
 0x29b   :  { %v354_v23 = vpop.f32.mrb[20].mxu1 }
 0x29c   :  { %712 = vmatmul.mubr.msk.f32.vlgmr.msra.gmra.mrb[22].mxu1 %vm170_vm2, %v354_v23  ;;  %v708_v24 = vpop.f32.mrb[21].mxu1 }
 0x36f   :  { %v433_v28 = vpop.f32.mrb[22].mxu1 }
 0x370   :  { %v434_v29 = vadd.f32 %v433_v28, %v359_v27  ;;  %v713_v30 = vpop.f32.mrb[23].mxu1 }
 0x372   :  { %v437_v31 = vmax.f32 %v434_v29, 0.0 }
 0x374   :  { %747 = vmatmul.mubr.msk.f32.vlgmr.msra.gmra.mrb[0].mxu0 %vm170_vm2, %v437_v31 }
 0x447   :  { %v566_v35 = vpop.f32.mrb[0].mxu0 }
 0x448   :  { %v567_v36 = vadd.f32 %v566_v35, %v447_v34  ;;  %v748_v9 = vpop.f32.mrb[1].mxu0 }
 0x44a   :  { %v624_v37 = vclamps-f32 %v567_v36, 30.0 }
 0x44c   :  { %v572_v38 = vsub.f32 0.0, %v624_v37 }
 0x44e   :  { %v573_v12 = vmul.f32 1.442695, %v572_v38 }
 0x450   :  { %794 = vpow2.f32 %v573_v12 }
 0x45a   :  { %v795_v11 = vpop.eup %794 }
 0x45b   :  { %v575_v39 = vadd.f32 1.0, %v795_v11 }
 0x45d   :  { %796 = vrcp.f32 %v575_v39 }
 0x467   :  { %v797_v40 = vpop.eup %796 }
 0x468   :  { %577 = vst [vmem:[#allocation2] sm:$0x1f] %v797_v40 }
 0x469   :  { %809 = shalt.err (!%p806_p4)
}
 0x46a   :  { %s810_s19 = scalar_lea.hbm %s1049_s5, 128 }
 0x46b   :  { %p811_p5 = scmp.ne.s32.totalorder %s1049_s5, %s810_s19  ;;  %p814_p6 = scmp.lt.u32.totalorder %s810_s19, %s1049_s5 }
 0x46d   :  { %p816_p7 = pnand %p814_p6, %p811_p5 }
 0x46f   :  { %819 = shalt.err (!%p816_p7)
}
 0x470   :  { %587 = dma.vmem_to_hbm [thread:$0]  %s585_s15, 128, %s1049_s5, [#allocation3]  }
 0x471   :  { %820 = dma.done.wait [#allocation3], 128  }
 0x472   :  { %821 = vsyncadd [#allocation3], 4294967168 }
 0x473   :  { %591 = vsyncpa [#allocation3], 1 }

</bundles_post_ra>
